<compile_context>
chip_gen: v5e
topology: v5e:2x2
jax: 0.10.0
libtpu: 0.0.40
codegen_flags: <defaults>
</compile_context>

<pallas_src>
import jax
import jax.numpy as jnp
from jax.experimental import pallas as pl
from jax.experimental.pallas import tpu as pltpu


_SUBLANE = {4: 8, 2: 16, 1: 32}           # packed sublane granule per itemsize
_RESIDENT_STATS_MAX_ROWS = 1024           # (R,1) f32 resident stats <= ~1 MiB


def _sublane_mult(itemsize):
    return _SUBLANE.get(itemsize, 8)


def _round_up(x, m):
    return ((x + m - 1) // m) * m


def _round_down(x, m):
    return (x // m) * m


def _normalize_kernel(mean_ref, inv_std_ref, img_ref, out_ref):
    # mean_ref / inv_std_ref: (rows, 1) f32 per-(n, c)-plane stats
    # img_ref / out_ref:      (rows, lane_tile) lane-dense image tiles
    # sub + mul only (the divide was folded into 1/std in the wrapper);
    # compute in f32, cast only the final store.
    x = img_ref[...].astype(jnp.float32)
    out_ref[...] = ((x - mean_ref[...]) * inv_std_ref[...]).astype(out_ref.dtype)


def _lane_tile(R, L, itemsize, target_tile_bytes):
    """Lane tile when all R rows fit in one block (common image-norm case)."""
    r_layout = _round_up(max(R, 1), _sublane_mult(itemsize))   # VMEM sublane pad
    target_elems = max(128 * r_layout, target_tile_bytes // itemsize)
    if r_layout * L <= target_elems:
        return L                           # full extent: always legal, 1 block
    return max(128, _round_down(target_elems // r_layout, 128))


def _row_lane_tiles(R, L, itemsize, target_tile_bytes):
    """(row, lane) tiles for the huge-R fallback (rows blocked as well)."""
    sm = _sublane_mult(itemsize)
    target_elems = max(sm * 128, target_tile_bytes // itemsize)
    if sm * L <= target_elems:
        tl = L
    else:
        tl = max(128, _round_down(target_elems // sm, 128))
    # +256 lanes accounts for the two lane-padded (tr, 1) stat blocks in VMEM.
    max_rows = max(sm, target_elems // (tl + 256))
    if max_rows >= R:
        return R, tl
    return max(sm, _round_down(max_rows, sm)), tl


def normalize_images(image, mean, std, *,
                     target_tile_bytes=2 << 20,
                     min_pallas_bytes=1 << 20):
    """Pallas equivalent of the PyTorch normalize_images.forward.

    image: (N, C, H, W); mean, std: (C,)
    returns (image - mean[:, None, None]) / std[:, None, None]
    """
    N, C, H, W = image.shape
    dtype = image.dtype
    itemsize = jnp.dtype(dtype).itemsize
    R, L = N * C, H * W

    mean_f32 = jnp.asarray(mean, dtype=jnp.float32).reshape(C)
    inv_std_f32 = 1.0 / jnp.asarray(std, dtype=jnp.float32).reshape(C)

    # Small-input fast path: launch + pipeline prologue would dominate; let XLA
    # fuse the elementwise expression instead.
    if R * L * itemsize < min_pallas_bytes:
        out = (image.astype(jnp.float32) - mean_f32[:, None, None]) \
              * inv_std_f32[:, None, None]
        return out.astype(dtype)

    # Per-row f32 stats matching the flattened layout (row = n*C + c).
    mean_rows = jnp.tile(mean_f32, N).reshape(R, 1)
    inv_std_rows = jnp.tile(inv_std_f32, N).reshape(R, 1)
    x2d = image.reshape(R, L)

    if R <= _RESIDENT_STATS_MAX_ROWS:
        # ---- common case: 1-D grid over lanes, stats resident for the grid ----
        tl = _lane_tile(R, L, itemsize, target_tile_bytes)
        grid = (pl.cdiv(L, tl),)
        stat_spec = pl.BlockSpec((R, 1), lambda j: (0, 0))       # fetched once
        img_spec = pl.BlockSpec((R, tl), lambda j: (0, j))
        dim_sem = ("parallel",)
    else:
        # ---- huge-R fallback: block rows too, stats delivered per row block ----
        tr, tl = _row_lane_tiles(R, L, itemsize, target_tile_bytes)
        grid = (pl.cdiv(R, tr), pl.cdiv(L, tl))
        stat_spec = pl.BlockSpec((tr, 1), lambda i, j: (i, 0))
        img_spec = pl.BlockSpec((tr, tl), lambda i, j: (i, j))
        dim_sem = ("parallel", "parallel")

    cost = pl.CostEstimate(
        flops=2 * R * L,
        transcendentals=0,
        bytes_accessed=2 * R * L * itemsize + 2 * R * 4,
    )

    out2d = pl.pallas_call(
        _normalize_kernel,
        out_shape=jax.ShapeDtypeStruct((R, L), dtype),
        grid=grid,
        in_specs=[stat_spec, stat_spec, img_spec],
        out_specs=img_spec,
        compiler_params=pltpu.CompilerParams(dimension_semantics=dim_sem),
        cost_estimate=cost,
    )(mean_rows, inv_std_rows, x2d)

    return out2d.reshape(N, C, H, W)


if __name__ == "__main__":
    key = jax.random.PRNGKey(0)

    # Small demo shape consistent with the module (batch=2, channels=4, 16x16).
    N, C, H, W = 2, 4, 16, 16
    image = jax.random.uniform(key, (N, C, H, W), dtype=jnp.float32)
    mean = jnp.array([0.485, 0.456, 0.406, 0.5], dtype=jnp.float32)
    std = jnp.array([0.229, 0.224, 0.225, 0.25], dtype=jnp.float32)

    ref = (image - mean[:, None, None]) / std[:, None, None]

    # 1) Pallas kernel path (force past the small-input XLA fallback).
    out = jax.block_until_ready(normalize_images(image, mean, std,
                                                 min_pallas_bytes=0))
    assert out.shape == (N, C, H, W) and out.dtype == image.dtype
    assert jnp.allclose(out, ref, atol=1e-5, rtol=1e-5)

    # 2) Default call on the tiny input exercises the small-input fast path.
    out_small = jax.block_until_ready(normalize_images(image, mean, std))
    assert jnp.allclose(out_small, ref, atol=1e-5, rtol=1e-5)

    # 3) A larger, non-128-divisible spatial size exercises the multi-block
    #    ragged lane grid + resident-stats path (still small enough to be fast).
    N2, C2, H2, W2 = 2, 3, 272, 272
    image2 = jax.random.uniform(jax.random.PRNGKey(0), (N2, C2, H2, W2),
                                dtype=jnp.float32)
    mean2 = jnp.array([0.485, 0.456, 0.406], dtype=jnp.float32)
    std2 = jnp.array([0.229, 0.224, 0.225], dtype=jnp.float32)
    out2 = jax.block_until_ready(normalize_images(image2, mean2, std2))
    ref2 = (image2 - mean2[:, None, None]) / std2[:, None, None]
    assert jnp.allclose(out2, ref2, atol=1e-5, rtol=1e-5)

    print("KERNEL_OK")
</pallas_src>

<mosaic_0001>
module attributes {stable_mosaic.version = 11 : i64} {
  func.func @_normalize_kernel(%arg0: i32, %arg1: memref<8x1xf32, #tpu.memory_space<vmem>>, %arg2: memref<8x1xf32, #tpu.memory_space<vmem>>, %arg3: memref<8x256xf32, #tpu.memory_space<vmem>>, %arg4: memref<8x256xf32, #tpu.memory_space<vmem>>) attributes {dimension_semantics = [#tpu.dimension_semantics<parallel>], iteration_bounds = array<i64: 1>, scalar_prefetch = 0 : i64, scratch_operands = 0 : i64, tpu.core_type = #tpu.core_type<tc>, window_params = [{pipeline_mode = #tpu.pipeline_mode<synchronous>, transform_indices = @transform_0, window_bounds = array<i64: 8, 1>}, {pipeline_mode = #tpu.pipeline_mode<synchronous>, transform_indices = @transform_1, window_bounds = array<i64: 8, 1>}, {transform_indices = @transform_2, window_bounds = array<i64: 8, 256>}, {transform_indices = @transform_3, window_bounds = array<i64: 8, 256>}]} {
    %c0 = arith.constant 0 : index
    %c0_0 = arith.constant 0 : index
    %0 = vector.load %arg3[%c0, %c0_0] : memref<8x256xf32, #tpu.memory_space<vmem>>, vector<8x256xf32>
    %c0_1 = arith.constant 0 : index
    %c0_2 = arith.constant 0 : index
    %1 = vector.load %arg1[%c0_1, %c0_2] : memref<8x1xf32, #tpu.memory_space<vmem>>, vector<8x1xf32>
    %2 = vector.broadcast %1 : vector<8x1xf32> to vector<8x256xf32>
    %3 = arith.subf %0, %2 : vector<8x256xf32>
    %c0_3 = arith.constant 0 : index
    %c0_4 = arith.constant 0 : index
    %4 = vector.load %arg2[%c0_3, %c0_4] : memref<8x1xf32, #tpu.memory_space<vmem>>, vector<8x1xf32>
    %5 = vector.broadcast %4 : vector<8x1xf32> to vector<8x256xf32>
    %6 = arith.mulf %3, %5 : vector<8x256xf32>
    %c0_5 = arith.constant 0 : index
    %c0_6 = arith.constant 0 : index
    %7 = vector.load %arg4[%c0_5, %c0_6] : memref<8x256xf32, #tpu.memory_space<vmem>>, vector<8x256xf32>
    tpu.vector_store %arg4[%c0_5, %c0_6], %6 {strides = array<i32>} : memref<8x256xf32, #tpu.memory_space<vmem>>, vector<8x256xf32>,
    return
  }
  func.func @transform_0(%arg0: i32) -> (i32, i32) {
    %c0_i32 = arith.constant 0 : i32
    %c0_i32_0 = arith.constant 0 : i32
    %c0_i32_1 = arith.constant 0 : i32
    return %c0_i32, %c0_i32_0 : i32, i32
  }
  func.func @transform_1(%arg0: i32) -> (i32, i32) {
    %c0_i32 = arith.constant 0 : i32
    %c0_i32_0 = arith.constant 0 : i32
    %c0_i32_1 = arith.constant 0 : i32
    return %c0_i32, %c0_i32_0 : i32, i32
  }
  func.func @transform_2(%arg0: i32) -> (i32, i32) {
    %c0_i32 = arith.constant 0 : i32
    %c0_i32_0 = arith.constant 0 : i32
    return %c0_i32, %arg0 : i32, i32
  }
  func.func @transform_3(%arg0: i32) -> (i32, i32) {
    %c0_i32 = arith.constant 0 : i32
    %c0_i32_0 = arith.constant 0 : i32
    return %c0_i32, %arg0 : i32, i32
  }
}

</mosaic_0001>

<bundles_post_ra>
// kernel: tpu_custom_call.1
= control target key start
LH: loop header
LB: loop body
LE: loop exit
PB: predicated region body
PF: predicated region fallthrough
CT: control target
= control target key end

     0   :  { %s117_s0 = inlined_call_operand.vmem [shape: f32[8,1], index: 0, kind: input, shape index: {}]   ;;  %s118_s1 = inlined_call_operand.vmem [shape: f32[8,1], index: 1, kind: input, shape index: {}]   ;;  %s119_s2 = inlined_call_operand.vmem [shape: f32[8,256], index: 2, kind: input, shape index: {}]   ;;  %s120_s3 = inlined_call_operand.hbm [shape: f32[8,256], index: 3, kind: output, shape index: {}]  }
   0x1   :  { %v17_v0 = vld [vmem:[%s117_s0] sm:$0xff] }
   0x2   :  { %8 = vsyncpa [#allocation3], 0  ;;  %v80_v1 = vmov 0   ;;  %v25_v2 = vld [vmem:[%s118_s1] sm:$0xff]  ;;  %v16_v5 = vld [vmem:[%s119_s2 + $0x8] sm:$0xff]  ;;  %s81_s0 = smov [#allocation2]  }
   0x3   :  { %53 = vset.pattern.permute.xlu0 %v80_v1  ;;  %v15_v4 = vld [vmem:[%s119_s2] sm:$0xff]  ;;  %s40_s20 = sshll.u32 %s81_s0, 4  ;;  %s42_s23 = sshll.u32 %s120_s3, 4  ;;  %s41_s20 = int_to_ptr.vmem [resolvable:$true] %s40_s20  ;;  %s43_s23 = int_to_ptr.hbm [resolvable:$true] %s42_s23 }
   0x4   :  { %20 = vperm.xlu0 %53, %v17_v0  }
   0xc   :  { %28 = vperm.xlu0 %53, %v25_v2  }
  0x76   :  { %v21_v3 = vpop.permute.xlu0 %20 }
  0x77   :  { %v23_v6 = vsub.f32 %v15_v4, %v21_v3  ;;  %v24_v7 = vsub.f32 %v16_v5, %v21_v3 }
  0x7e   :  { %v29_v8 = vpop.permute.xlu0 %28 }
  0x7f   :  { %v31_v9 = vmul.f32 %v29_v8, %v23_v6  ;;  %v32_v10 = vmul.f32 %v29_v8, %v24_v7 }
  0x81   :  { %33 = vst [vmem:[#allocation2] sm:$0xff] %v31_v9 }
  0x82   :  { %34 = vst [vmem:[#allocation2 + $0x8] sm:$0xff] %v32_v10 }
  0x83   :  { %45 = dma.vmem_to_hbm [thread:$0]  %s41_s20, 256, %s43_s23, [#allocation3]  }
  0x84   :  { %78 = dma.done.wait [#allocation3], 256  }
  0x85   :  { %79 = vsyncadd [#allocation3], 4294967040 }
  0x86   :  { %50 = vsyncpa [#allocation3], 1 }

</bundles_post_ra>
